<compile_context>
chip_gen: v7x
topology: tpu7x:2x2x1
jax: 0.10.0
libtpu: 0.0.40
codegen_flags: <defaults>
</compile_context>

<pallas_src>
import functools

import jax
import jax.numpy as jnp
from jax.experimental import pallas as pl
from jax.experimental.pallas import tpu as pltpu


_LANES = 512                       # lane-dense last dim (multiple of 128 -> unmasked full-width stores)
_BLOCK_BYTES = 8 * 1024 * 1024     # ~8 MiB per block, dtype-independent (byte-based row cap)
_VMEM_LIMIT_BYTES = 48 * 1024 * 1024  # 4 x block (in+out, double-buffered) = 32 MiB, + headroom
_MIN_SPLIT_ROWS = 32               # below this, a single full-extent block is fine


def _round_up(x, m):
    return ((x + m - 1) // m) * m


# ----------------------------- backward kernel ----------------------------- #

def _reverse_grad_kernel(g_ref, o_ref, *, lambda_, clip_value_):
    g = g_ref[...]
    if clip_value_ > 0:  # static Python branch — baked in at trace time
        g = jnp.clip(g, -clip_value_, clip_value_)
    # Python-float constants are weakly typed (no promotion for bf16 grads);
    # explicit cast keeps the store exactly o_ref.dtype.
    o_ref[...] = ((-lambda_) * g).astype(o_ref.dtype)


def _reverse_grad_pallas(g, lambda_, clip_value_):
    orig_shape = g.shape
    total = g.size
    if total == 0:  # degenerate empty gradient
        return (-float(lambda_) * g).astype(g.dtype)

    itemsize = jnp.dtype(g.dtype).itemsize

    # Exact row count — no round-up to the tile, Pallas handles the ragged
    # final row-block of a blocked index_map.
    rows = pl.cdiv(total, _LANES)

    # Byte-based row tile: ~_BLOCK_BYTES per block for the actual dtype.
    max_rows = _round_up(max(8, _BLOCK_BYTES // (_LANES * itemsize)), 8)
    if rows < _MIN_SPLIT_ROWS:
        # Tiny gradient: one full-extent block (exempt from the (8,128) rule).
        tm = int(rows)
    else:
        # At least ~4 blocks (pipelining + v7x megacore), capped by byte budget;
        # tm is a multiple of 8 so ragged final blocks stay (8,128)-aligned.
        tm = min(max_rows, _round_up(pl.cdiv(rows, 4), 8))
    grid = (pl.cdiv(rows, tm),)

    # Pad ONLY when the element count is not lane-aligned; the aligned common
    # case is a pure reshape (bitcast) and the in-place alias hits the
    # caller's gradient buffer directly.
    flat = g.reshape(-1)
    padded_total = int(rows) * _LANES
    if padded_total != total:
        flat = jnp.pad(flat, (0, padded_total - total))
    g2 = flat.reshape(int(rows), _LANES)

    kernel = functools.partial(
        _reverse_grad_kernel,
        lambda_=float(lambda_),
        clip_value_=float(clip_value_),
    )

    out = pl.pallas_call(
        kernel,
        out_shape=jax.ShapeDtypeStruct(g2.shape, g.dtype),
        grid=grid,
        in_specs=[pl.BlockSpec((tm, _LANES), lambda i: (i, 0))],
        out_specs=pl.BlockSpec((tm, _LANES), lambda i: (i, 0)),
        # Rewrite the gradient in place (real saving whenever no pad occurred).
        input_output_aliases={0: 0},
        cost_estimate=pl.CostEstimate(
            flops=int(total),
            transcendentals=0,
            bytes_accessed=2 * int(total) * int(itemsize),
        ),
        compiler_params=pltpu.CompilerParams(
            dimension_semantics=("parallel",),        # shard grid across TCs (v7x megacore)
            vmem_limit_bytes=_VMEM_LIMIT_BYTES,       # 4 x 8 MiB blocks + headroom
        ),
    )(g2)

    out_flat = out.reshape(-1)
    if padded_total != total:
        out_flat = out_flat[:total]
    return out_flat.reshape(orig_shape)


# ---------------------------- custom-vjp wiring ----------------------------- #

@functools.partial(jax.custom_vjp, nondiff_argnums=(1, 2))
def gradient_reversal(x, lambda_=1.0, clip_value_=-1.0):
    # Forward is the identity — no Pallas copy, zero HBM traffic.
    return x


def _grl_fwd(x, lambda_, clip_value_):
    return x, None


def _grl_bwd(lambda_, clip_value_, _, g):
    return (_reverse_grad_pallas(g, lambda_, clip_value_),)


gradient_reversal.defvjp(_grl_fwd, _grl_bwd)


# ------------------------------ module wrapper ------------------------------ #

class GradientReversal:
    """JAX/Pallas equivalent of the PyTorch GradientReversal module."""

    def __init__(self, lambda_=1.0, clip_value_=-1.0):
        # Buffers are plain static floats (deterministic, no checkpoint needed).
        self.lambda_ = float(lambda_)
        self.clip_value_ = float(clip_value_)

    def __call__(self, x):
        return gradient_reversal(x, self.lambda_, self.clip_value_)


# ---------------------------------- main ------------------------------------ #

if __name__ == "__main__":
    key = jax.random.PRNGKey(0)
    x = jax.random.normal(key, (2, 4, 16, 16), dtype=jnp.float32)  # NCHW

    module = GradientReversal(lambda_=1.0, clip_value_=-1.0)

    # Forward pass: identity (no kernel).
    y = jax.block_until_ready(module(x))
    assert y.shape == x.shape and y.dtype == x.dtype
    assert bool(jnp.allclose(y, x)), "forward must be identity"

    # Backward pass: grads are reversed (multiplied by -lambda).
    loss = lambda v: jnp.sum(module(v) * 2.0)
    dx = jax.block_until_ready(jax.grad(loss)(x))
    assert bool(jnp.allclose(dx, -2.0 * jnp.ones_like(x))), "grad must be -lambda * upstream"

    # Backward pass with clipping enabled (clamp then scale, like PyTorch).
    module_clip = GradientReversal(lambda_=0.5, clip_value_=1.0)
    loss_c = lambda v: jnp.sum(module_clip(v) * 3.0)  # upstream 3 -> clipped to 1
    dx_c = jax.block_until_ready(jax.grad(loss_c)(x))
    assert bool(jnp.allclose(dx_c, -0.5 * jnp.ones_like(x))), "clipped grad mismatch"

    # Non-lane-aligned shape exercises the pad / slice path.
    x_odd = jax.random.normal(jax.random.PRNGKey(1), (3, 5, 7), dtype=jnp.float32)
    dx_odd = jax.block_until_ready(jax.grad(lambda v: jnp.sum(module(v)))(x_odd))
    assert dx_odd.shape == x_odd.shape
    assert bool(jnp.allclose(dx_odd, -jnp.ones_like(x_odd))), "odd-shape grad mismatch"

    # bf16 gradients exercise the explicit downcast before the store.
    x_bf = x.astype(jnp.bfloat16)
    module_bf = GradientReversal(lambda_=2.0, clip_value_=-1.0)
    dx_bf = jax.block_until_ready(
        jax.grad(lambda v: jnp.sum(module_bf(v).astype(jnp.float32)))(x_bf))
    assert dx_bf.dtype == jnp.bfloat16
    assert bool(jnp.allclose(dx_bf.astype(jnp.float32),
                             -2.0 * jnp.ones(x.shape, jnp.float32))), "bf16 grad mismatch"

    # Lane-aligned, multi-block shape exercises the no-pad / grid>1 /
    # in-place-alias path (rows=64 >= 32 -> split into >=4 (8,128) blocks).
    x_big = jax.random.normal(jax.random.PRNGKey(2), (64, 512), dtype=jnp.float32)
    dx_big = jax.block_until_ready(
        jax.grad(lambda v: jnp.sum(module_clip(v) * 3.0))(x_big))
    assert bool(jnp.allclose(dx_big, -0.5 * jnp.ones_like(x_big))), "multi-block grad mismatch"

    print("KERNEL_OK")
</pallas_src>

<mosaic_0001>
module attributes {stable_mosaic.version = 11 : i64} {
  func.func @_reverse_grad_kernel(%arg0: i32, %arg1: memref<4x512xf32, #tpu.memory_space<vmem>>, %arg2: memref<4x512xf32, #tpu.memory_space<vmem>>) attributes {dimension_semantics = [#tpu.dimension_semantics<parallel>], iteration_bounds = array<i64: 1>, scalar_prefetch = 0 : i64, scratch_operands = 0 : i64, tpu.core_type = #tpu.core_type<tc>, window_params = [{transform_indices = @transform_0, window_bounds = array<i64: 4, 512>}, {transform_indices = @transform_1, window_bounds = array<i64: 4, 512>}]} {
    %c0 = arith.constant 0 : index
    %c0_0 = arith.constant 0 : index
    %0 = vector.load %arg1[%c0, %c0_0] : memref<4x512xf32, #tpu.memory_space<vmem>>, vector<4x512xf32>
    %cst = arith.constant -1.000000e+00 : f32
    %1 = vector.broadcast %cst : f32 to vector<4x512xf32>
    %2 = arith.mulf %1, %0 : vector<4x512xf32>
    %c0_1 = arith.constant 0 : index
    %c0_2 = arith.constant 0 : index
    %3 = vector.load %arg2[%c0_1, %c0_2] : memref<4x512xf32, #tpu.memory_space<vmem>>, vector<4x512xf32>
    tpu.vector_store %arg2[%c0_1, %c0_2], %2 {strides = array<i32>} : memref<4x512xf32, #tpu.memory_space<vmem>>, vector<4x512xf32>,
    return
  }
  func.func @transform_0(%arg0: i32) -> (i32, i32) {
    %c0_i32 = arith.constant 0 : i32
    %c0_i32_0 = arith.constant 0 : i32
    return %arg0, %c0_i32 : i32, i32
  }
  func.func @transform_1(%arg0: i32) -> (i32, i32) {
    %c0_i32 = arith.constant 0 : i32
    %c0_i32_0 = arith.constant 0 : i32
    return %arg0, %c0_i32 : i32, i32
  }
}

</mosaic_0001>

<bundles_post_ra>
// kernel: tpu_custom_call.1
= control target key start
LH: loop header
LB: loop body
LE: loop exit
PB: predicated region body
PF: predicated region fallthrough
CT: control target
= control target key end

     0   :  { %6 = vsyncpa [#allocation3], 0  ;;  %s128_s0 = inlined_call_operand.hbm [shape: f32[4,512], index: 0, kind: input, shape index: {}, may-alias: {0,1}]   ;;  %s129_s1 = inlined_call_operand.hbm [shape: f32[4,512], index: 1, kind: output, shape index: {}, may-alias: {0,1}]  }
   0x1   :  { %7 = vsyncpa [#allocation4], 0  ;;  %s92_s6 = smov [#allocation2]   ;;  %s44_s10 = scalar_lea.hbm %s128_s0, 256 }
   0x2   :  { %s14_s7 = sshll.u32 %s92_s6, 4  ;;  %p45_p0 = scmp.ne.s32.totalorder %s128_s0, %s44_s10  ;;  %s15_s7 = int_to_ptr.vmem [resolvable:$true] %s14_s7 }
   0x3   :  { %p48_p1 = scmp.lt.u32.totalorder %s44_s10, %s128_s0 }
   0x5   :  { %p50_p2 = pnand %p48_p1, %p45_p0 }
   0x7   :  { %53 = shalt.err (!%p50_p2)
}
   0x8   :  { %s54_s15 = scalar_lea.vmem %s15_s7, 256  ;;  %p59_p4 = scmp.lt.s32.totalorder %s15_s7, %s15_s7 }
   0x9   :  { %p55_p3 = scmp.ne.s32.totalorder %s15_s7, %s54_s15  ;;  %p60_p5 = scmp.lt.s32.totalorder %s54_s15, %s54_s15 }
   0xb   :  { %p61_p6 = por %p60_p5, %p59_p4 }
   0xd   :  { %p62_p7 = pnand %p61_p6, %p55_p3 }
   0xf   :  { %65 = shalt.err (!%p62_p7)
}
  0x10   :  { %17 = dma.hbm_to_vmem [thread:$0]  %s128_s0, 256, %s15_s7, [#allocation3]  }
  0x11   :  { %88 = dma.done.wait [#allocation3], 256  }
  0x12   :  { %89 = vsyncadd [#allocation3], 4294967040  ;;  %s93_s18 = smov [#allocation5]   ;;  %v21_v0 = vld [vmem:[#allocation2] sm:$0xff]  ;;  %v22_v1 = vld [vmem:[#allocation2 + $0x8] sm:$0xff] }
  0x13   :  { %s33_s19 = sshll.u32 %s93_s18, 4  ;;  %v23_v2 = vmul.f32 -1.0, %v21_v0  ;;  %v24_v3 = vmul.f32 -1.0, %v22_v1  ;;  %s34_s19 = int_to_ptr.vmem [resolvable:$true] %s33_s19 }
  0x14   :  { %s66_s20 = scalar_lea.vmem %s34_s19, 256  ;;  %p71_p9 = scmp.lt.s32.totalorder %s34_s19, %s34_s19 }
  0x15   :  { %25 = vst [vmem:[#allocation5] sm:$0xff] %v23_v2  ;;  %26 = vst [vmem:[#allocation5 + $0x8] sm:$0xff] %v24_v3  ;;  %p67_p8 = scmp.ne.s32.totalorder %s34_s19, %s66_s20  ;;  %p72_p10 = scmp.lt.s32.totalorder %s66_s20, %s66_s20 }
  0x17   :  { %p73_p11 = por %p72_p10, %p71_p9 }
  0x19   :  { %p74_p12 = pnand %p73_p11, %p67_p8 }
  0x1b   :  { %77 = shalt.err (!%p74_p12)
}
  0x1c   :  { %s78_s22 = scalar_lea.hbm %s129_s1, 256 }
  0x1d   :  { %p79_p13 = scmp.ne.s32.totalorder %s129_s1, %s78_s22  ;;  %p82_p0 = scmp.lt.u32.totalorder %s78_s22, %s129_s1 }
  0x1f   :  { %p84_p1 = pnand %p82_p0, %p79_p13 }
  0x21   :  { %87 = shalt.err (!%p84_p1)
}
  0x22   :  { %36 = dma.vmem_to_hbm [thread:$0]  %s34_s19, 256, %s129_s1, [#allocation4]  }
  0x23   :  { %90 = dma.done.wait [#allocation4], 256  }
  0x24   :  { %91 = vsyncadd [#allocation4], 4294967040 }
  0x25   :  { %40 = vsyncpa [#allocation3], 1 }
  0x26   :  { %41 = vsyncpa [#allocation4], 1 }

</bundles_post_ra>
